<compile_context>
chip_gen: v5e
topology: v5e:2x2
jax: 0.10.0
libtpu: 0.0.40
codegen_flags: <defaults>
</compile_context>

<pallas_src>
import jax
import jax.numpy as jnp
from jax.experimental import pallas as pl
from jax.experimental.pallas import tpu as pltpu

_LANE = 128


def _cdiv(a, b):
    return -(-a // b)


def _round_up(x, m):
    return _cdiv(x, m) * m


def _even_tiles(dim, tile_max, align):
    """Tile size (multiple of `align`, <= tile_max) that minimizes padding of
    `dim` while using the fewest tiles.  Returns (tile, padded_dim)."""
    dim_a = _round_up(max(dim, 1), align)
    tile_max = max(align, _round_up(min(tile_max, dim_a), align))
    n = _cdiv(dim_a, tile_max)
    tile = _round_up(_cdiv(dim_a, n), align)
    return tile, tile * n


def _pick_vmem_limit():
    cap = 64 * 1024 * 1024
    try:
        cap = int(getattr(pltpu.get_tpu_info(), "vmem_capacity_bytes", cap))
    except Exception:
        pass
    if cap >= 128 * 1024 * 1024:      # v5e / v6e: 128 MiB physical VMEM
        return 64 * 1024 * 1024
    if cap >= 64 * 1024 * 1024:       # v7x: 64 MiB physical per TensorCore
        return 48 * 1024 * 1024
    return max(16 * 1024 * 1024, cap // 2)


def _working_set_bytes(tm, tn, tk, multi_k, in_isz):
    return (2 * (tm * tk + tk * tn) * in_isz   # double-buffered x / W tiles
            + 2 * tm * tn * 4                  # double-buffered out tile (f32 worst case)
            + (tm * tn * 4 if multi_k else 0)  # f32 accumulator scratch
            + 2 * tn * 4)                      # bias tile


# ------------------------------ kernels -------------------------------------


def _linear_kernel_single_k(x_ref, w_ref, b_ref, o_ref):
    # Whole reduction in one MXU pass: no accumulator round-trip, no branches.
    y = jnp.dot(x_ref[...], w_ref[...], preferred_element_type=jnp.float32)
    y = y + b_ref[...].astype(jnp.float32)
    o_ref[...] = jnp.maximum(y, 0.0).astype(o_ref.dtype)


def _linear_kernel_multi_k(x_ref, w_ref, b_ref, o_ref, acc_ref):
    # K-last reduction grid (this path always has >= 2 K steps).
    k = pl.program_id(2)
    nk = pl.num_programs(2)
    partial = jnp.dot(x_ref[...], w_ref[...], preferred_element_type=jnp.float32)

    @pl.when(k == 0)
    def _init():
        acc_ref[...] = partial

    @pl.when(jnp.logical_and(k > 0, k < nk - 1))
    def _accumulate():
        acc_ref[...] += partial

    @pl.when(k == nk - 1)
    def _epilogue():
        # Fuse the final partial product with bias + ReLU: no extra (tm, tn)
        # f32 accumulator store + reload on the critical last K step.
        y = acc_ref[...] + partial + b_ref[...].astype(jnp.float32)
        o_ref[...] = jnp.maximum(y, 0.0).astype(o_ref.dtype)


# ------------------------------ wrapper --------------------------------------


def init_linear_block(weight, bias, *, tm_hint=512, tn_max=512, tk_max=2048,
                      compute_dtype=None):
    """One-time parameter prep: pad (and optionally cast) W/b, pick N/K tiles.

    weight: [in_features, out_features] (pre-transposed vs. PyTorch nn.Linear)
    bias:   [out_features]
    """
    F_in, F_out = weight.shape
    assert bias.shape == (F_out,)
    cdtype = jnp.dtype(compute_dtype) if compute_dtype is not None else jnp.dtype(weight.dtype)
    in_isz = cdtype.itemsize
    sublane = max(8, 32 // max(in_isz, 1))          # 8 for f32, 16 for bf16
    tm_hint = max(sublane, _round_up(tm_hint, sublane))

    vmem_limit = _pick_vmem_limit()
    budget = (3 * vmem_limit) // 4                  # headroom for compiler scratch

    tn, Np = _even_tiles(F_out, tn_max, _LANE)
    Kp128 = _round_up(F_in, _LANE)

    if Kp128 <= tk_max and _working_set_bytes(tm_hint, tn, Kp128, False, in_isz) <= budget:
        tk, Kp = Kp128, Kp128                        # single-K fast path (2-D grid)
    else:
        tk_cap = max(_LANE, min(tk_max, Kp128))
        while True:
            tk, Kp = _even_tiles(F_in, tk_cap, _LANE)
            if tk_cap <= _LANE or _working_set_bytes(tm_hint, tn, tk, True, in_isz) <= budget:
                break
            tk_cap = max(_LANE, tk_cap // 2)

    # Zero-padding K / N is exact for a linear layer; done once here, not per call.
    wp = weight.astype(cdtype)
    if (Kp, Np) != (F_in, F_out):
        wp = jnp.pad(wp, ((0, Kp - F_in), (0, Np - F_out)))
    bp = bias.astype(jnp.float32)
    if Np != F_out:
        bp = jnp.pad(bp, (0, Np - F_out))
    bp = bp.reshape(1, Np)

    return dict(wp=wp, bp=bp, F_in=F_in, F_out=F_out, Kp=Kp, Np=Np,
                tn=tn, tk=tk, tm_hint=tm_hint, sublane=sublane,
                compute_dtype=cdtype, vmem_limit=vmem_limit)


def apply_linear_block(x, params):
    """y = relu(x @ W + b) with pre-prepared params (see init_linear_block)."""
    F_in, F_out = params["F_in"], params["F_out"]
    Kp, Np, tk, tn = params["Kp"], params["Np"], params["tk"], params["tn"]
    cdtype = params["compute_dtype"]
    lead = x.shape[:-1]
    assert x.shape[-1] == F_in
    out_dtype = x.dtype

    x2 = x.reshape(-1, F_in)
    B = x2.shape[0]
    tm, Mp = _even_tiles(B, params["tm_hint"], params["sublane"])

    xp = x2.astype(cdtype) if x2.dtype != cdtype else x2
    if (Mp, Kp) != (B, F_in):
        xp = jnp.pad(xp, ((0, Mp - B), (0, Kp - F_in)))

    grid_m, grid_n, grid_k = Mp // tm, Np // tn, Kp // tk

    # Keep both v7x TensorCores busy: ensure the parallel (M, N) grid has >= 2
    # steps when N can be re-split (no-op on 1-TC v5e/v6e).
    if grid_m * grid_n < 2 and Np >= 2 * _LANE:
        for tn_c in range(tn - _LANE, _LANE - 1, -_LANE):
            if Np % tn_c == 0:
                tn, grid_n = tn_c, Np // tn_c
                break

    in_isz = cdtype.itemsize
    out_isz = jnp.dtype(out_dtype).itemsize
    cost = pl.CostEstimate(
        flops=2 * Mp * Np * Kp,
        transcendentals=0,
        bytes_accessed=int(Mp * Kp * in_isz * grid_n      # x re-read per N tile
                           + Kp * Np * in_isz * grid_m    # W re-read per M tile
                           + Np * 4                       # bias
                           + Mp * Np * out_isz),          # output
    )
    compiler_params = pltpu.CompilerParams(
        dimension_semantics=("parallel", "parallel")
        + (("arbitrary",) if grid_k > 1 else ()),
        vmem_limit_bytes=int(params["vmem_limit"]),
    )

    if grid_k == 1:
        out = pl.pallas_call(
            _linear_kernel_single_k,
            out_shape=jax.ShapeDtypeStruct((Mp, Np), out_dtype),
            grid_spec=pltpu.PrefetchScalarGridSpec(
                num_scalar_prefetch=0,
                grid=(grid_m, grid_n),
                in_specs=[
                    pl.BlockSpec((tm, tk), lambda i, j: (i, 0)),
                    pl.BlockSpec((tk, tn), lambda i, j: (0, j)),
                    pl.BlockSpec((1, tn), lambda i, j: (0, j)),
                ],
                out_specs=pl.BlockSpec((tm, tn), lambda i, j: (i, j)),
            ),
            compiler_params=compiler_params,
            cost_estimate=cost,
        )(xp, params["wp"], params["bp"])
    else:
        out = pl.pallas_call(
            _linear_kernel_multi_k,
            out_shape=jax.ShapeDtypeStruct((Mp, Np), out_dtype),
            grid_spec=pltpu.PrefetchScalarGridSpec(
                num_scalar_prefetch=0,
                grid=(grid_m, grid_n, grid_k),
                in_specs=[
                    pl.BlockSpec((tm, tk), lambda i, j, k: (i, k)),
                    pl.BlockSpec((tk, tn), lambda i, j, k: (k, j)),
                    pl.BlockSpec((1, tn), lambda i, j, k: (0, j)),
                ],
                out_specs=pl.BlockSpec((tm, tn), lambda i, j, k: (i, j)),
                scratch_shapes=[pltpu.VMEM((tm, tn), jnp.float32)],
            ),
            compiler_params=compiler_params,
            cost_estimate=cost,
        )(xp, params["wp"], params["bp"])

    y = out[:B, :F_out]
    return y.reshape(*lead, F_out)


def linear_block(x, weight, bias, **init_kwargs):
    """One-shot convenience: init + apply."""
    return apply_linear_block(x, init_linear_block(weight, bias, **init_kwargs))


def _reference(x, weight, bias):
    return jnp.maximum(x @ weight + bias, 0.0)


if __name__ == "__main__":
    key = jax.random.PRNGKey(0)
    k_x, k_w, k_b, k_x2, k_w2, k_b2 = jax.random.split(key, 6)

    # --- Case 1: module-like sizes; takes the single-K (2-D grid) fast path. ---
    B, in_f, out_f = 8, 32, 64
    bound = 1.0 / jnp.sqrt(jnp.float32(in_f))
    x = jax.random.normal(k_x, (B, in_f), dtype=jnp.float32)
    w = jax.random.uniform(k_w, (in_f, out_f), dtype=jnp.float32,
                           minval=-bound, maxval=bound)
    b = jax.random.uniform(k_b, (out_f,), dtype=jnp.float32,
                           minval=-bound, maxval=bound)

    params = init_linear_block(w, b)               # pads W/b once
    y = jax.block_until_ready(apply_linear_block(x, params))
    ref = _reference(x, w, b)
    assert y.shape == (B, out_f)
    assert jnp.allclose(y, ref, atol=1e-5, rtol=1e-5), "mismatch (single-K path)"

    # --- Case 2: force the multi-step K accumulation path (3-D grid) and the
    #     grid_n >= 2 split that keeps both v7x TensorCores busy. ---
    B2, in2, out2 = 16, 384, 256
    bound2 = 1.0 / jnp.sqrt(jnp.float32(in2))
    x2 = jax.random.normal(k_x2, (B2, in2), dtype=jnp.float32)
    w2 = jax.random.uniform(k_w2, (in2, out2), dtype=jnp.float32,
                            minval=-bound2, maxval=bound2)
    b2 = jax.random.uniform(k_b2, (out2,), dtype=jnp.float32,
                            minval=-bound2, maxval=bound2)

    params2 = init_linear_block(w2, b2, tk_max=128)   # tk=128 -> 3 K steps
    y2 = jax.block_until_ready(apply_linear_block(x2, params2))
    ref2 = _reference(x2, w2, b2)
    assert y2.shape == (B2, out2)
    assert jnp.allclose(y2, ref2, atol=1e-4, rtol=1e-4), "mismatch (multi-K path)"

    # --- Case 3: bf16 compute path (MXU-native), f32 accumulation / output. ---
    params3 = init_linear_block(w2, b2, compute_dtype=jnp.bfloat16)
    y3 = jax.block_until_ready(apply_linear_block(x2, params3))
    assert y3.shape == (B2, out2)
    assert jnp.allclose(y3, ref2, atol=3e-2, rtol=3e-2), "mismatch (bf16 path)"

    print("KERNEL_OK")
</pallas_src>

<mosaic_0001>
module attributes {stable_mosaic.version = 11 : i64} {
  func.func @_linear_kernel_single_k(%arg0: i32, %arg1: i32, %arg2: memref<8x128xf32, #tpu.memory_space<vmem>>, %arg3: memref<128x128xf32, #tpu.memory_space<vmem>>, %arg4: memref<1x128xf32, #tpu.memory_space<vmem>>, %arg5: memref<8x128xf32, #tpu.memory_space<vmem>>) attributes {dimension_semantics = [#tpu.dimension_semantics<parallel>, #tpu.dimension_semantics<parallel>], iteration_bounds = array<i64: 1, 1>, scalar_prefetch = 0 : i64, scratch_operands = 0 : i64, tpu.core_type = #tpu.core_type<tc>, window_params = [{transform_indices = @transform_0, window_bounds = array<i64: 8, 128>}, {transform_indices = @transform_1, window_bounds = array<i64: 128, 128>}, {transform_indices = @transform_2, window_bounds = array<i64: 1, 128>}, {transform_indices = @transform_3, window_bounds = array<i64: 8, 128>}]} {
    %c0 = arith.constant 0 : index
    %c0_0 = arith.constant 0 : index
    %0 = vector.load %arg2[%c0, %c0_0] : memref<8x128xf32, #tpu.memory_space<vmem>>, vector<8x128xf32>
    %c0_1 = arith.constant 0 : index
    %c0_2 = arith.constant 0 : index
    %1 = vector.load %arg3[%c0_1, %c0_2] : memref<128x128xf32, #tpu.memory_space<vmem>>, vector<128x128xf32>
    %cst = arith.constant dense<0.000000e+00> : vector<8x128xf32>
    %2 = tpu.matmul %0, %1, %cst {dimension_numbers = #tpu.dot_dimension_numbers<[1], [0], [0], [1], [0, 0, 1, 1], [], []>} : vector<8x128xf32>, vector<128x128xf32>, vector<8x128xf32> -> vector<8x128xf32>
    %c0_3 = arith.constant 0 : index
    %c0_4 = arith.constant 0 : index
    %3 = vector.load %arg4[%c0_3, %c0_4] : memref<1x128xf32, #tpu.memory_space<vmem>>, vector<1x128xf32>
    %4 = vector.broadcast %3 : vector<1x128xf32> to vector<8x128xf32>
    %5 = arith.addf %2, %4 : vector<8x128xf32>
    %cst_5 = arith.constant 0.000000e+00 : f32
    %6 = vector.broadcast %cst_5 : f32 to vector<8x128xf32>
    %7 = arith.maximumf %5, %6 : vector<8x128xf32>
    %c0_6 = arith.constant 0 : index
    %c0_7 = arith.constant 0 : index
    %8 = vector.load %arg5[%c0_6, %c0_7] : memref<8x128xf32, #tpu.memory_space<vmem>>, vector<8x128xf32>
    tpu.vector_store %arg5[%c0_6, %c0_7], %7 {strides = array<i32>} : memref<8x128xf32, #tpu.memory_space<vmem>>, vector<8x128xf32>,
    return
  }
  func.func @transform_0(%arg0: i32, %arg1: i32) -> (i32, i32) {
    %c0_i32 = arith.constant 0 : i32
    %c0_i32_0 = arith.constant 0 : i32
    return %arg0, %c0_i32 : i32, i32
  }
  func.func @transform_1(%arg0: i32, %arg1: i32) -> (i32, i32) {
    %c0_i32 = arith.constant 0 : i32
    %c0_i32_0 = arith.constant 0 : i32
    return %c0_i32, %arg1 : i32, i32
  }
  func.func @transform_2(%arg0: i32, %arg1: i32) -> (i32, i32) {
    %c0_i32 = arith.constant 0 : i32
    %c0_i32_0 = arith.constant 0 : i32
    return %c0_i32, %arg1 : i32, i32
  }
  func.func @transform_3(%arg0: i32, %arg1: i32) -> (i32, i32) {
    %c0_i32 = arith.constant 0 : i32
    return %arg0, %arg1 : i32, i32
  }
}

</mosaic_0001>

<bundles_post_ra>
// kernel: tpu_custom_call.1
= control target key start
LH: loop header
LB: loop body
LE: loop exit
PB: predicated region body
PF: predicated region fallthrough
CT: control target
= control target key end

     0   :  { %8 = vsyncpa [#allocation3], 0  ;;  %s227_s0 = inlined_call_operand.hbm [shape: f32[8,128], index: 0, kind: input, shape index: {}]   ;;  %s228_s1 = inlined_call_operand.hbm [shape: f32[128,128], index: 1, kind: input, shape index: {}]   ;;  %s229_s2 = inlined_call_operand.vmem [shape: f32[1,128], index: 2, kind: input, shape index: {}]   ;;  %s230_s3 = inlined_call_operand.hbm [shape: f32[8,128], index: 3, kind: output, shape index: {}]  }
   0x1   :  { %9 = vsyncpa [#allocation6], 0 }
   0x2   :  { %10 = vsyncpa [#allocation4], 0  ;;  %s16_s14 = sshll.u32 %s227_s0, 4  ;;  %s190_s15 = smov [#allocation2]   ;;  %s17_s14 = int_to_ptr.hbm [resolvable:$true] %s16_s14 }
   0x3   :  { %s18_s16 = sshll.u32 %s190_s15, 4  ;;  %s26_s19 = sshll.u32 %s228_s1, 4  ;;  %s19_s16 = int_to_ptr.vmem [resolvable:$true] %s18_s16  ;;  %s27_s19 = int_to_ptr.hbm [resolvable:$true] %s26_s19 }
   0x4   :  { %21 = dma.hbm_to_vmem [thread:$0]  %s17_s14, 128, %s19_s16, [#allocation3]  }
   0x5   :  { %s191_s20 = smov [#allocation5]   ;;  %s192_s22 = smov 128  }
   0x6   :  { %s28_s21 = sshll.u32 %s191_s20, 4  ;;  %s193_s23 = smov 8   ;;  %s29_s21 = int_to_ptr.vmem [resolvable:$true] %s28_s21 }
   0x7   :  { %34 = dma.hbm_to_vmem [thread:$0]  %s27_s19, 2048, %s29_s21, [#allocation6], %s192_s22, %s192_s22, %s193_s23  }
   0x8   :  { %184 = dma.done.wait [#allocation3], 128  }
   0x9   :  { %185 = vsyncadd [#allocation3], 4294967168 }
   0xa   :  { %186 = dma.done.wait [#allocation6], 2048  }
   0xb   :  { %187 = vsyncadd [#allocation6], 4294965248  ;;  %v61_v0 = vld [vmem:[#allocation5 + $0x78] sm:$0xff]  ;;  %v60_v1 = vld [vmem:[#allocation5 + $0x70] sm:$0xff]  ;;  %s194_s24 = smov [#allocation7]   ;;  %s95_s28 = sshll.u32 %s230_s3, 4  ;;  %s96_s28 = int_to_ptr.hbm [resolvable:$true] %s95_s28 }
   0xc   :  { %66 = vmatpush.msra.mxu0 %v61_v0  ;;  %v59_v2 = vld [vmem:[#allocation5 + $0x68] sm:$0xff]  ;;  %v58_v3 = vld [vmem:[#allocation5 + $0x60] sm:$0xff]  ;;  %v57_v4 = vld [vmem:[#allocation5 + $0x58] sm:$0xff]  ;;  %s93_s25 = sshll.u32 %s194_s24, 4  ;;  %s94_s25 = int_to_ptr.vmem [resolvable:$true] %s93_s25 }
   0xd   :  { %v56_v5 = vld [vmem:[#allocation5 + $0x50] sm:$0xff]  ;;  %v55_v6 = vld [vmem:[#allocation5 + $0x48] sm:$0xff]  ;;  %v54_v7 = vld [vmem:[#allocation5 + $0x40] sm:$0xff] }
   0xe   :  { %67 = vmatpush.msra.mxu0 %v60_v1  ;;  %v53_v8 = vld [vmem:[#allocation5 + $0x38] sm:$0xff]  ;;  %v52_v9 = vld [vmem:[#allocation5 + $0x30] sm:$0xff]  ;;  %v51_v10 = vld [vmem:[#allocation5 + $0x28] sm:$0xff] }
   0xf   :  { %v50_v11 = vld [vmem:[#allocation5 + $0x20] sm:$0xff]  ;;  %v49_v12 = vld [vmem:[#allocation5 + $0x18] sm:$0xff]  ;;  %v48_v13 = vld [vmem:[#allocation5 + $0x10] sm:$0xff] }
  0x10   :  { %68 = vmatpush.msra.mxu0 %v59_v2  ;;  %v47_v14 = vld [vmem:[#allocation5 + $0x8] sm:$0xff]  ;;  %v46_v15 = vld [vmem:[#allocation5] sm:$0xff]  ;;  %v45_v16 = vld [vmem:[#allocation2] sm:$0xff] }
  0x11   :  { %v111_v17 = vld [vmem:[%s229_s2] ss:$0 sm:$0xff] }
  0x12   :  { %69 = vmatpush.msra.mxu0 %v58_v3 }
  0x14   :  { %70 = vmatpush.msra.mxu0 %v57_v4 }
  0x16   :  { %71 = vmatpush.msra.mxu0 %v56_v5 }
  0x18   :  { %72 = vmatpush.msra.mxu0 %v55_v6 }
  0x1a   :  { %73 = vmatpush.msra.mxu0 %v54_v7 }
  0x1c   :  { %74 = vmatpush.msra.mxu0 %v53_v8 }
  0x1e   :  { %75 = vmatpush.msra.mxu0 %v52_v9 }
  0x20   :  { %76 = vmatpush.msra.mxu0 %v51_v10 }
  0x22   :  { %77 = vmatpush.msra.mxu0 %v50_v11 }
  0x24   :  { %78 = vmatpush.msra.mxu0 %v49_v12 }
  0x26   :  { %79 = vmatpush.msra.mxu0 %v48_v13 }
  0x28   :  { %80 = vmatpush.msra.mxu0 %v47_v14 }
  0x2a   :  { %81 = vmatpush.msra.mxu0 %v46_v15 }
  0x2b   :  { %82 = vmatmul.f32.vlgmr.msra.gmra.mxu0 %v45_v16 }
  0xa8   :  { %v83_v18 = vpop.f32.mrf.mxu0 }
  0xa9   :  { %v84_v19 = vadd.f32 %v111_v17, %v83_v18 }
  0xab   :  { %v86_v20 = vmax.f32 %v84_v19, 0.0 }
  0xad   :  { %87 = vst [vmem:[#allocation7] sm:$0xff] %v86_v20 }
  0xae   :  { %98 = dma.vmem_to_hbm [thread:$0]  %s94_s25, 128, %s96_s28, [#allocation4]  }
  0xaf   :  { %188 = dma.done.wait [#allocation4], 128  }
  0xb0   :  { %189 = vsyncadd [#allocation4], 4294967168 }
  0xb1   :  { %103 = vsyncpa [#allocation3], 1 }
  0xb2   :  { %104 = vsyncpa [#allocation6], 1 }
  0xb3   :  { %105 = vsyncpa [#allocation4], 1 }

</bundles_post_ra>
